<compile_context>
chip_gen: v5e
topology: v5e:2x2
jax: 0.10.0
libtpu: 0.0.40
codegen_flags: <defaults>
</compile_context>

<pallas_src>
import functools

import jax
import jax.numpy as jnp
from jax import lax
from jax.experimental import pallas as pl
from jax.experimental.pallas import tpu as pltpu


def transformer_block_kernel(
    x_ref,
    wq_ref, bq_ref, wk_ref, bk_ref, wv_ref, bv_ref, wo_ref, bo_ref,
    g1_ref, be1_ref,
    w1_ref, b1_ref, w2_ref, b2_ref,
    g2_ref, be2_ref,
    o_ref,
    *, eps,
):
    Bb, T, D = x_ref.shape
    x = x_ref[...]                                   # (Bb, T, D) f32
    x_tok = x.reshape(Bb * T, D)                     # leading-dim merge only (layout-free)
    x_mm = x_tok.astype(wq_ref.dtype)                # bf16 MXU operand

    # ---- projections (1/sqrt(D) pre-folded into wq / bq at pack time) ----
    q = jnp.dot(x_mm, wq_ref[...], preferred_element_type=jnp.float32) + bq_ref[...]
    k = jnp.dot(x_mm, wk_ref[...], preferred_element_type=jnp.float32) + bk_ref[...]
    v = jnp.dot(x_mm, wv_ref[...], preferred_element_type=jnp.float32) + bv_ref[...]

    # ---- attention scores: bf16 operands on the MXU, f32 accumulation ----
    q3 = q.reshape(Bb, T, D).astype(jnp.bfloat16)
    k3 = k.reshape(Bb, T, D).astype(jnp.bfloat16)
    scores = lax.dot_general(
        q3, k3, dimension_numbers=(((2,), (2,)), ((0,), (0,))),
        preferred_element_type=jnp.float32)          # (Bb, T, T)

    # softmax statistics in f32 (max-subtraction kept f32 for stability);
    # divide replaced by EUP approximate reciprocal + VALU multiply.
    scores = scores - jnp.max(scores, axis=-1, keepdims=True)
    p = jnp.exp(scores)
    denom = jnp.sum(p, axis=-1, keepdims=True)
    attn_w = p * pl.reciprocal(denom, approx=True)

    v3 = v.reshape(Bb, T, D).astype(jnp.bfloat16)
    attn = lax.dot_general(
        attn_w.astype(jnp.bfloat16), v3,
        dimension_numbers=(((2,), (1,)), ((0,), (0,))),
        preferred_element_type=jnp.float32)          # (Bb, T, D)

    attn = jnp.dot(attn.reshape(Bb * T, D).astype(wo_ref.dtype), wo_ref[...],
                   preferred_element_type=jnp.float32) + bo_ref[...]
    # attention dropout (p=0.1): identity in eval mode

    # ---- residual + LayerNorm 1 (f32 statistics, full-precision residual) ----
    h = x_tok + attn
    mu = jnp.mean(h, axis=-1, keepdims=True)
    var = jnp.mean((h - mu) ** 2, axis=-1, keepdims=True)
    h = (h - mu) * lax.rsqrt(var + eps) * g1_ref[...] + be1_ref[...]

    # ---- feed-forward: Linear -> ReLU -> Linear (bf16 operands, f32 accum) ----
    f = jnp.dot(h.astype(w1_ref.dtype), w1_ref[...],
                preferred_element_type=jnp.float32) + b1_ref[...]
    f = jnp.maximum(f, 0.0)
    f = jnp.dot(f.astype(w2_ref.dtype), w2_ref[...],
                preferred_element_type=jnp.float32) + b2_ref[...]
    # ff dropout: identity in eval mode

    # ---- residual + LayerNorm 2 ----
    h2 = h + f
    mu2 = jnp.mean(h2, axis=-1, keepdims=True)
    var2 = jnp.mean((h2 - mu2) ** 2, axis=-1, keepdims=True)
    out = (h2 - mu2) * lax.rsqrt(var2 + eps) * g2_ref[...] + be2_ref[...]

    o_ref[...] = out.reshape(Bb, T, D).astype(o_ref.dtype)


_PARAM_ORDER = ("wq", "bq", "wk", "bk", "wv", "bv", "wo", "bo",
                "g1", "be1", "w1", "b1", "w2", "b2", "g2", "be2")


def pack_params(params, *, compute_dtype=jnp.bfloat16):
    """One-time weight packing (call outside the hot path): bf16 matmul weights,
    f32 biases / LN params, 1/sqrt(D) folded into wq and bq."""
    D = params["wq"].shape[0]
    scale = 1.0 / (D ** 0.5)
    f32 = jnp.float32
    return {
        "wq": (params["wq"] * scale).astype(compute_dtype),
        "bq": (params["bq"] * scale).astype(f32),
        "wk": params["wk"].astype(compute_dtype), "bk": params["bk"].astype(f32),
        "wv": params["wv"].astype(compute_dtype), "bv": params["bv"].astype(f32),
        "wo": params["wo"].astype(compute_dtype), "bo": params["bo"].astype(f32),
        "g1": params["g1"].astype(f32), "be1": params["be1"].astype(f32),
        "w1": params["w1"].astype(compute_dtype), "b1": params["b1"].astype(f32),
        "w2": params["w2"].astype(compute_dtype), "b2": params["b2"].astype(f32),
        "g2": params["g2"].astype(f32), "be2": params["be2"].astype(f32),
    }


def _vmem_limit_bytes(Bb, T, D, F):
    """Resident weights (single-buffered) + I/O blocks (double-buffered) +
    f32 intermediates, with 2x margin.  Clamped to [32 MiB, 64 MiB] so the
    value is valid on v5e/v6e (128 MiB physical) and v7x (64 MiB physical)."""
    bf16, f32 = 2, 4
    n = Bb * T
    weights = (4 * D * D + 2 * D * F) * bf16
    small = (7 * D + F) * f32 * 8                      # biases + LN params (+ pad slack)
    io = 2 * (n * D * f32) * 2                         # x block + out block, 2-deep
    acts = (3 * n * D + Bb * T * T + 2 * n * F + 4 * n * D) * f32
    est = weights + small + io + acts
    return int(min(max(2 * est, 32 << 20), 64 << 20))


def transformer_block(x, packed, *, batch_block=1, out_dtype=jnp.float32, eps=1e-5):
    """x: (B, T, D) float32; packed: output of pack_params()."""
    B, T, D = x.shape
    Bb = batch_block
    assert B % Bb == 0, "batch_block must divide B"
    assert B // Bb >= 1
    F = packed["w1"].shape[1]
    param_vals = [packed[k] for k in _PARAM_ORDER]

    def param_spec(arr):
        # Constant-index parameter: single-buffered to halve resident weight VMEM.
        return pl.BlockSpec(arr.shape, lambda b: (0, 0), pipeline_mode=pl.Buffered(1))

    in_specs = ([pl.BlockSpec((Bb, T, D), lambda b: (b, 0, 0))]
                + [param_spec(p) for p in param_vals])
    out_spec = pl.BlockSpec((Bb, T, D), lambda b: (b, 0, 0))

    kernel = functools.partial(transformer_block_kernel, eps=eps)

    return pl.pallas_call(
        kernel,
        out_shape=jax.ShapeDtypeStruct((B, T, D), out_dtype),
        grid_spec=pltpu.PrefetchScalarGridSpec(
            num_scalar_prefetch=0,
            grid=(B // Bb,),                  # >= 2 steps -> both TCs on v7x + pipelining
            in_specs=in_specs,
            out_specs=out_spec,
        ),
        compiler_params=pltpu.CompilerParams(
            dimension_semantics=("parallel",),
            vmem_limit_bytes=_vmem_limit_bytes(Bb, T, D, F),
        ),
    )(x, *param_vals)


def transformer_block_ref(x, p):
    """Pure-JAX f32 reference mirroring the PyTorch forward (eval mode)."""
    eps = 1e-5
    B, T, D = x.shape
    q = x @ p["wq"] + p["bq"]
    k = x @ p["wk"] + p["bk"]
    v = x @ p["wv"] + p["bv"]
    scores = jnp.einsum("btd,bsd->bts", q, k) / (D ** 0.5)
    w = jax.nn.softmax(scores, axis=-1)
    attn = jnp.einsum("bts,bsd->btd", w, v)
    attn = attn @ p["wo"] + p["bo"]

    def ln(h, g, b):
        mu = jnp.mean(h, axis=-1, keepdims=True)
        var = jnp.mean((h - mu) ** 2, axis=-1, keepdims=True)
        return (h - mu) * lax.rsqrt(var + eps) * g + b

    h = ln(x + attn, p["g1"], p["be1"])
    f = jnp.maximum(h @ p["w1"] + p["b1"], 0.0) @ p["w2"] + p["b2"]
    return ln(h + f, p["g2"], p["be2"])


def init_params(key, embed_dim, ff_hidden):
    D, Fh = embed_dim, ff_hidden
    keys = jax.random.split(key, 10)
    s = 0.05
    return {
        "wq": jax.random.normal(keys[0], (D, D), jnp.float32) * s,
        "bq": jax.random.normal(keys[1], (1, D), jnp.float32) * s,
        "wk": jax.random.normal(keys[2], (D, D), jnp.float32) * s,
        "bk": jax.random.normal(keys[3], (1, D), jnp.float32) * s,
        "wv": jax.random.normal(keys[4], (D, D), jnp.float32) * s,
        "bv": jax.random.normal(keys[5], (1, D), jnp.float32) * s,
        "wo": jax.random.normal(keys[6], (D, D), jnp.float32) * s,
        "bo": jax.random.normal(keys[7], (1, D), jnp.float32) * s,
        # LayerNorm params (PyTorch default init: weight=1, bias=0)
        "g1": jnp.ones((1, D), jnp.float32),
        "be1": jnp.zeros((1, D), jnp.float32),
        "w1": jax.random.normal(keys[8], (D, Fh), jnp.float32) * s,
        "b1": jnp.zeros((1, Fh), jnp.float32),
        "w2": jax.random.normal(keys[9], (Fh, D), jnp.float32) * s,
        "b2": jnp.zeros((1, D), jnp.float32),
        "g2": jnp.ones((1, D), jnp.float32),
        "be2": jnp.zeros((1, D), jnp.float32),
    }


if __name__ == "__main__":
    B, T, D = 2, 8, 32        # batch, seq, embed_dim (num_heads unused by the forward)
    FF_HIDDEN = 64

    key = jax.random.PRNGKey(0)
    kx, kp = jax.random.split(key)
    x = jax.random.normal(kx, (B, T, D), jnp.float32)
    params = init_params(kp, D, FF_HIDDEN)

    # Pre-quantize x and matmul weights to bf16-representable values so the f32
    # reference and the bf16-operand kernel see (near-)identical operands; the
    # check then isolates kernel arithmetic (f32 accumulation, bf16 casts of
    # intermediates, approximate reciprocal).
    def q_bf16(a):
        return a.astype(jnp.bfloat16).astype(jnp.float32)

    mm_keys = ("wq", "wk", "wv", "wo", "w1", "w2")
    x = q_bf16(x)
    params = {k: (q_bf16(v) if k in mm_keys else v) for k, v in params.items()}

    # One-time pack (hoisted out of the hot path): bf16 casts + scale folding.
    packed = pack_params(params)

    out = jax.block_until_ready(transformer_block(x, packed, batch_block=1))
    ref = transformer_block_ref(x, params)

    assert out.shape == (B, T, D)
    assert jnp.allclose(out, ref, atol=2e-2, rtol=2e-2), "mismatch vs JAX reference"

    print("KERNEL_OK")
</pallas_src>

<mosaic_0001>
module attributes {stable_mosaic.version = 11 : i64} {
  func.func @transformer_block_kernel(%arg0: i32, %arg1: memref<1x8x32xf32, #tpu.memory_space<vmem>>, %arg2: memref<32x32xbf16, #tpu.memory_space<vmem>>, %arg3: memref<1x32xf32, #tpu.memory_space<vmem>>, %arg4: memref<32x32xbf16, #tpu.memory_space<vmem>>, %arg5: memref<1x32xf32, #tpu.memory_space<vmem>>, %arg6: memref<32x32xbf16, #tpu.memory_space<vmem>>, %arg7: memref<1x32xf32, #tpu.memory_space<vmem>>, %arg8: memref<32x32xbf16, #tpu.memory_space<vmem>>, %arg9: memref<1x32xf32, #tpu.memory_space<vmem>>, %arg10: memref<1x32xf32, #tpu.memory_space<vmem>>, %arg11: memref<1x32xf32, #tpu.memory_space<vmem>>, %arg12: memref<32x64xbf16, #tpu.memory_space<vmem>>, %arg13: memref<1x64xf32, #tpu.memory_space<vmem>>, %arg14: memref<64x32xbf16, #tpu.memory_space<vmem>>, %arg15: memref<1x32xf32, #tpu.memory_space<vmem>>, %arg16: memref<1x32xf32, #tpu.memory_space<vmem>>, %arg17: memref<1x32xf32, #tpu.memory_space<vmem>>, %arg18: memref<1x8x32xf32, #tpu.memory_space<vmem>>) attributes {dimension_semantics = [#tpu.dimension_semantics<parallel>], iteration_bounds = array<i64: 2>, scalar_prefetch = 0 : i64, scratch_operands = 0 : i64, tpu.core_type = #tpu.core_type<tc>, window_params = [{transform_indices = @transform_0, window_bounds = array<i64: 1, 8, 32>}, {pipeline_mode = #tpu.pipeline_mode<synchronous>, transform_indices = @transform_1, window_bounds = array<i64: 32, 32>}, {pipeline_mode = #tpu.pipeline_mode<synchronous>, transform_indices = @transform_2, window_bounds = array<i64: 1, 32>}, {pipeline_mode = #tpu.pipeline_mode<synchronous>, transform_indices = @transform_3, window_bounds = array<i64: 32, 32>}, {pipeline_mode = #tpu.pipeline_mode<synchronous>, transform_indices = @transform_4, window_bounds = array<i64: 1, 32>}, {pipeline_mode = #tpu.pipeline_mode<synchronous>, transform_indices = @transform_5, window_bounds = array<i64: 32, 32>}, {pipeline_mode = #tpu.pipeline_mode<synchronous>, transform_indices = @transform_6, window_bounds = array<i64: 1, 32>}, {pipeline_mode = #tpu.pipeline_mode<synchronous>, transform_indices = @transform_7, window_bounds = array<i64: 32, 32>}, {pipeline_mode = #tpu.pipeline_mode<synchronous>, transform_indices = @transform_8, window_bounds = array<i64: 1, 32>}, {pipeline_mode = #tpu.pipeline_mode<synchronous>, transform_indices = @transform_9, window_bounds = array<i64: 1, 32>}, {pipeline_mode = #tpu.pipeline_mode<synchronous>, transform_indices = @transform_10, window_bounds = array<i64: 1, 32>}, {pipeline_mode = #tpu.pipeline_mode<synchronous>, transform_indices = @transform_11, window_bounds = array<i64: 32, 64>}, {pipeline_mode = #tpu.pipeline_mode<synchronous>, transform_indices = @transform_12, window_bounds = array<i64: 1, 64>}, {pipeline_mode = #tpu.pipeline_mode<synchronous>, transform_indices = @transform_13, window_bounds = array<i64: 64, 32>}, {pipeline_mode = #tpu.pipeline_mode<synchronous>, transform_indices = @transform_14, window_bounds = array<i64: 1, 32>}, {pipeline_mode = #tpu.pipeline_mode<synchronous>, transform_indices = @transform_15, window_bounds = array<i64: 1, 32>}, {pipeline_mode = #tpu.pipeline_mode<synchronous>, transform_indices = @transform_16, window_bounds = array<i64: 1, 32>}, {transform_indices = @transform_17, window_bounds = array<i64: 1, 8, 32>}]} {
    %c0 = arith.constant 0 : index
    %c0_0 = arith.constant 0 : index
    %c0_1 = arith.constant 0 : index
    %0 = vector.load %arg1[%c0, %c0_0, %c0_1] : memref<1x8x32xf32, #tpu.memory_space<vmem>>, vector<1x8x32xf32>
    %1 = vector.shape_cast %0 : vector<1x8x32xf32> to vector<8x32xf32>
    %2 = arith.truncf %1 : vector<8x32xf32> to vector<8x32xbf16>
    %c0_2 = arith.constant 0 : index
    %c0_3 = arith.constant 0 : index
    %3 = vector.load %arg2[%c0_2, %c0_3] : memref<32x32xbf16, #tpu.memory_space<vmem>>, vector<32x32xbf16>
    %cst = arith.constant dense<0.000000e+00> : vector<8x32xf32>
    %4 = tpu.matmul %2, %3, %cst {dimension_numbers = #tpu.dot_dimension_numbers<[1], [0], [0], [1], [0, 0, 1, 1], [], []>} : vector<8x32xbf16>, vector<32x32xbf16>, vector<8x32xf32> -> vector<8x32xf32>
    %c0_4 = arith.constant 0 : index
    %c0_5 = arith.constant 0 : index
    %5 = vector.load %arg3[%c0_4, %c0_5] : memref<1x32xf32, #tpu.memory_space<vmem>>, vector<1x32xf32>
    %6 = vector.broadcast %5 : vector<1x32xf32> to vector<8x32xf32>
    %7 = arith.addf %4, %6 : vector<8x32xf32>
    %c0_6 = arith.constant 0 : index
    %c0_7 = arith.constant 0 : index
    %8 = vector.load %arg4[%c0_6, %c0_7] : memref<32x32xbf16, #tpu.memory_space<vmem>>, vector<32x32xbf16>
    %cst_8 = arith.constant dense<0.000000e+00> : vector<8x32xf32>
    %9 = tpu.matmul %2, %8, %cst_8 {dimension_numbers = #tpu.dot_dimension_numbers<[1], [0], [0], [1], [0, 0, 1, 1], [], []>} : vector<8x32xbf16>, vector<32x32xbf16>, vector<8x32xf32> -> vector<8x32xf32>
    %c0_9 = arith.constant 0 : index
    %c0_10 = arith.constant 0 : index
    %10 = vector.load %arg5[%c0_9, %c0_10] : memref<1x32xf32, #tpu.memory_space<vmem>>, vector<1x32xf32>
    %11 = vector.broadcast %10 : vector<1x32xf32> to vector<8x32xf32>
    %12 = arith.addf %9, %11 : vector<8x32xf32>
    %c0_11 = arith.constant 0 : index
    %c0_12 = arith.constant 0 : index
    %13 = vector.load %arg6[%c0_11, %c0_12] : memref<32x32xbf16, #tpu.memory_space<vmem>>, vector<32x32xbf16>
    %cst_13 = arith.constant dense<0.000000e+00> : vector<8x32xf32>
    %14 = tpu.matmul %2, %13, %cst_13 {dimension_numbers = #tpu.dot_dimension_numbers<[1], [0], [0], [1], [0, 0, 1, 1], [], []>} : vector<8x32xbf16>, vector<32x32xbf16>, vector<8x32xf32> -> vector<8x32xf32>
    %c0_14 = arith.constant 0 : index
    %c0_15 = arith.constant 0 : index
    %15 = vector.load %arg7[%c0_14, %c0_15] : memref<1x32xf32, #tpu.memory_space<vmem>>, vector<1x32xf32>
    %16 = vector.broadcast %15 : vector<1x32xf32> to vector<8x32xf32>
    %17 = arith.addf %14, %16 : vector<8x32xf32>
    %18 = vector.shape_cast %7 : vector<8x32xf32> to vector<1x8x32xf32>
    %19 = arith.truncf %18 : vector<1x8x32xf32> to vector<1x8x32xbf16>
    %20 = vector.shape_cast %12 : vector<8x32xf32> to vector<1x8x32xf32>
    %21 = arith.truncf %20 : vector<1x8x32xf32> to vector<1x8x32xbf16>
    %cst_16 = arith.constant dense<0.000000e+00> : vector<1x8x8xf32>
    %22 = tpu.matmul %19, %21, %cst_16 {dimension_numbers = #tpu.dot_dimension_numbers<[2], [2], [1], [1], [0, 0, 0, 1, 1, 1], [0], [0]>} : vector<1x8x32xbf16>, vector<1x8x32xbf16>, vector<1x8x8xf32> -> vector<1x8x8xf32>
    %cst_17 = arith.constant dense<0xFF800000> : vector<1x8xf32>
    %23 = vector.multi_reduction <maximumf>, %22, %cst_17 [2] : vector<1x8x8xf32> to vector<1x8xf32>
    %24 = vector.shape_cast %23 : vector<1x8xf32> to vector<1x8x1xf32>
    %25 = vector.broadcast %24 : vector<1x8x1xf32> to vector<1x8x8xf32>
    %26 = arith.subf %22, %25 : vector<1x8x8xf32>
    %27 = math.exp %26 : vector<1x8x8xf32>
    %cst_18 = arith.constant dense<0.000000e+00> : vector<1x8xf32>
    %28 = vector.multi_reduction <add>, %27, %cst_18 [2] : vector<1x8x8xf32> to vector<1x8xf32>
    %29 = vector.shape_cast %28 : vector<1x8xf32> to vector<1x8x1xf32>
    %30 = tpu.reciprocal %29 {approx = true} : vector<1x8x1xf32> -> vector<1x8x1xf32>
    %31 = vector.broadcast %30 : vector<1x8x1xf32> to vector<1x8x8xf32>
    %32 = arith.mulf %27, %31 : vector<1x8x8xf32>
    %33 = vector.shape_cast %17 : vector<8x32xf32> to vector<1x8x32xf32>
    %34 = arith.truncf %33 : vector<1x8x32xf32> to vector<1x8x32xbf16>
    %35 = arith.truncf %32 : vector<1x8x8xf32> to vector<1x8x8xbf16>
    %cst_19 = arith.constant dense<0.000000e+00> : vector<1x8x32xf32>
    %36 = tpu.matmul %35, %34, %cst_19 {dimension_numbers = #tpu.dot_dimension_numbers<[2], [1], [1], [2], [0, 0, 0, 1, 1, 2], [0], [0]>} : vector<1x8x8xbf16>, vector<1x8x32xbf16>, vector<1x8x32xf32> -> vector<1x8x32xf32>
    %37 = vector.shape_cast %36 : vector<1x8x32xf32> to vector<8x32xf32>
    %38 = arith.truncf %37 : vector<8x32xf32> to vector<8x32xbf16>
    %c0_20 = arith.constant 0 : index
    %c0_21 = arith.constant 0 : index
    %39 = vector.load %arg8[%c0_20, %c0_21] : memref<32x32xbf16, #tpu.memory_space<vmem>>, vector<32x32xbf16>
    %cst_22 = arith.constant dense<0.000000e+00> : vector<8x32xf32>
    %40 = tpu.matmul %38, %39, %cst_22 {dimension_numbers = #tpu.dot_dimension_numbers<[1], [0], [0], [1], [0, 0, 1, 1], [], []>} : vector<8x32xbf16>, vector<32x32xbf16>, vector<8x32xf32> -> vector<8x32xf32>
    %c0_23 = arith.constant 0 : index
    %c0_24 = arith.constant 0 : index
    %41 = vector.load %arg9[%c0_23, %c0_24] : memref<1x32xf32, #tpu.memory_space<vmem>>, vector<1x32xf32>
    %42 = vector.broadcast %41 : vector<1x32xf32> to vector<8x32xf32>
    %43 = arith.addf %40, %42 : vector<8x32xf32>
    %44 = arith.addf %1, %43 : vector<8x32xf32>
    %cst_25 = arith.constant dense<0.000000e+00> : vector<8xf32>
    %45 = vector.multi_reduction <add>, %44, %cst_25 [1] : vector<8x32xf32> to vector<8xf32>
    %46 = vector.shape_cast %45 : vector<8xf32> to vector<8x1xf32>
    %cst_26 = arith.constant 3.200000e+01 : f32
    %47 = vector.broadcast %cst_26 : f32 to vector<8x1xf32>
    %48 = arith.divf %46, %47 : vector<8x1xf32>
    %49 = vector.broadcast %48 : vector<8x1xf32> to vector<8x32xf32>
    %50 = arith.subf %44, %49 : vector<8x32xf32>
    %51 = arith.mulf %50, %50 : vector<8x32xf32>
    %cst_27 = arith.constant dense<0.000000e+00> : vector<8xf32>
    %52 = vector.multi_reduction <add>, %51, %cst_27 [1] : vector<8x32xf32> to vector<8xf32>
    %53 = vector.shape_cast %52 : vector<8xf32> to vector<8x1xf32>
    %cst_28 = arith.constant 3.200000e+01 : f32
    %54 = vector.broadcast %cst_28 : f32 to vector<8x1xf32>
    %55 = arith.divf %53, %54 : vector<8x1xf32>
    %56 = vector.broadcast %48 : vector<8x1xf32> to vector<8x32xf32>
    %57 = arith.subf %44, %56 : vector<8x32xf32>
    %cst_29 = arith.constant 9.99999974E-6 : f32
    %58 = vector.broadcast %cst_29 : f32 to vector<8x1xf32>
    %59 = arith.addf %55, %58 : vector<8x1xf32>
    %60 = math.rsqrt %59 : vector<8x1xf32>
    %61 = vector.broadcast %60 : vector<8x1xf32> to vector<8x32xf32>
    %62 = arith.mulf %57, %61 : vector<8x32xf32>
    %c0_30 = arith.constant 0 : index
    %c0_31 = arith.constant 0 : index
    %63 = vector.load %arg10[%c0_30, %c0_31] : memref<1x32xf32, #tpu.memory_space<vmem>>, vector<1x32xf32>
    %64 = vector.broadcast %63 : vector<1x32xf32> to vector<8x32xf32>
    %65 = arith.mulf %62, %64 : vector<8x32xf32>
    %c0_32 = arith.constant 0 : index
    %c0_33 = arith.constant 0 : index
    %66 = vector.load %arg11[%c0_32, %c0_33] : memref<1x32xf32, #tpu.memory_space<vmem>>, vector<1x32xf32>
    %67 = vector.broadcast %66 : vector<1x32xf32> to vector<8x32xf32>
    %68 = arith.addf %65, %67 : vector<8x32xf32>
    %69 = arith.truncf %68 : vector<8x32xf32> to vector<8x32xbf16>
    %c0_34 = arith.constant 0 : index
    %c0_35 = arith.constant 0 : index
    %70 = vector.load %arg12[%c0_34, %c0_35] : memref<32x64xbf16, #tpu.memory_space<vmem>>, vector<32x64xbf16>
    %cst_36 = arith.constant dense<0.000000e+00> : vector<8x64xf32>
    %71 = tpu.matmul %69, %70, %cst_36 {dimension_numbers = #tpu.dot_dimension_numbers<[1], [0], [0], [1], [0, 0, 1, 1], [], []>} : vector<8x32xbf16>, vector<32x64xbf16>, vector<8x64xf32> -> vector<8x64xf32>
    %c0_37 = arith.constant 0 : index
    %c0_38 = arith.constant 0 : index
    %72 = vector.load %arg13[%c0_37, %c0_38] : memref<1x64xf32, #tpu.memory_space<vmem>>, vector<1x64xf32>
    %73 = vector.broadcast %72 : vector<1x64xf32> to vector<8x64xf32>
    %74 = arith.addf %71, %73 : vector<8x64xf32>
    %cst_39 = arith.constant 0.000000e+00 : f32
    %75 = vector.broadcast %cst_39 : f32 to vector<8x64xf32>
    %76 = arith.maximumf %74, %75 : vector<8x64xf32>
    %77 = arith.truncf %76 : vector<8x64xf32> to vector<8x64xbf16>
    %c0_40 = arith.constant 0 : index
    %c0_41 = arith.constant 0 : index
    %78 = vector.load %arg14[%c0_40, %c0_41] : memref<64x32xbf16, #tpu.memory_space<vmem>>, vector<64x32xbf16>
    %cst_42 = arith.constant dense<0.000000e+00> : vector<8x32xf32>
    %79 = tpu.matmul %77, %78, %cst_42 {dimension_numbers = #tpu.dot_dimension_numbers<[1], [0], [0], [1], [0, 0, 1, 1], [], []>} : vector<8x64xbf16>, vector<64x32xbf16>, vector<8x32xf32> -> vector<8x32xf32>
    %c0_43 = arith.constant 0 : index
    %c0_44 = arith.constant 0 : index
    %80 = vector.load %arg15[%c0_43, %c0_44] : memref<1x32xf32, #tpu.memory_space<vmem>>, vector<1x32xf32>
    %81 = vector.broadcast %80 : vector<1x32xf32> to vector<8x32xf32>
    %82 = arith.addf %79, %81 : vector<8x32xf32>
    %83 = arith.addf %68, %82 : vector<8x32xf32>
    %cst_45 = arith.constant dense<0.000000e+00> : vector<8xf32>
    %84 = vector.multi_reduction <add>, %83, %cst_45 [1] : vector<8x32xf32> to vector<8xf32>
    %85 = vector.shape_cast %84 : vector<8xf32> to vector<8x1xf32>
    %cst_46 = arith.constant 3.200000e+01 : f32
    %86 = vector.broadcast %cst_46 : f32 to vector<8x1xf32>
    %87 = arith.divf %85, %86 : vector<8x1xf32>
    %88 = vector.broadcast %87 : vector<8x1xf32> to vector<8x32xf32>
    %89 = arith.subf %83, %88 : vector<8x32xf32>
    %90 = arith.mulf %89, %89 : vector<8x32xf32>
    %cst_47 = arith.constant dense<0.000000e+00> : vector<8xf32>
    %91 = vector.multi_reduction <add>, %90, %cst_47 [1] : vector<8x32xf32> to vector<8xf32>
    %92 = vector.shape_cast %91 : vector<8xf32> to vector<8x1xf32>
    %cst_48 = arith.constant 3.200000e+01 : f32
    %93 = vector.broadcast %cst_48 : f32 to vector<8x1xf32>
    %94 = arith.divf %92, %93 : vector<8x1xf32>
    %95 = vector.broadcast %87 : vector<8x1xf32> to vector<8x32xf32>
    %96 = arith.subf %83, %95 : vector<8x32xf32>
    %cst_49 = arith.constant 9.99999974E-6 : f32
    %97 = vector.broadcast %cst_49 : f32 to vector<8x1xf32>
    %98 = arith.addf %94, %97 : vector<8x1xf32>
    %99 = math.rsqrt %98 : vector<8x1xf32>
    %100 = vector.broadcast %99 : vector<8x1xf32> to vector<8x32xf32>
    %101 = arith.mulf %96, %100 : vector<8x32xf32>
    %c0_50 = arith.constant 0 : index
    %c0_51 = arith.constant 0 : index
    %102 = vector.load %arg16[%c0_50, %c0_51] : memref<1x32xf32, #tpu.memory_space<vmem>>, vector<1x32xf32>
    %103 = vector.broadcast %102 : vector<1x32xf32> to vector<8x32xf32>
    %104 = arith.mulf %101, %103 : vector<8x32xf32>
    %c0_52 = arith.constant 0 : index
    %c0_53 = arith.constant 0 : index
    %105 = vector.load %arg17[%c0_52, %c0_53] : memref<1x32xf32, #tpu.memory_space<vmem>>, vector<1x32xf32>
    %106 = vector.broadcast %105 : vector<1x32xf32> to vector<8x32xf32>
    %107 = arith.addf %104, %106 : vector<8x32xf32>
    %108 = vector.shape_cast %107 : vector<8x32xf32> to vector<1x8x32xf32>
    %c0_54 = arith.constant 0 : index
    %c0_55 = arith.constant 0 : index
    %c0_56 = arith.constant 0 : index
    %109 = vector.load %arg18[%c0_54, %c0_55, %c0_56] : memref<1x8x32xf32, #tpu.memory_space<vmem>>, vector<1x8x32xf32>
    tpu.vector_store %arg18[%c0_54, %c0_55, %c0_56], %108 {strides = array<i32>} : memref<1x8x32xf32, #tpu.memory_space<vmem>>, vector<1x8x32xf32>,
    return
  }
  func.func @transform_0(%arg0: i32) -> (i32, i32, i32) {
    %c0_i32 = arith.constant 0 : i32
    %c0_i32_0 = arith.constant 0 : i32
    %c0_i32_1 = arith.constant 0 : i32
    return %arg0, %c0_i32, %c0_i32_0 : i32, i32, i32
  }
  func.func @transform_1(%arg0: i32) -> (i32, i32) {
    %c0_i32 = arith.constant 0 : i32
    %c0_i32_0 = arith.constant 0 : i32
    %c0_i32_1 = arith.constant 0 : i32
    return %c0_i32, %c0_i32_0 : i32, i32
  }
  func.func @transform_2(%arg0: i32) -> (i32, i32) {
    %c0_i32 = arith.constant 0 : i32
    %c0_i32_0 = arith.constant 0 : i32
    %c0_i32_1 = arith.constant 0 : i32
    return %c0_i32, %c0_i32_0 : i32, i32
  }
  func.func @transform_3(%arg0: i32) -> (i32, i32) {
    %c0_i32 = arith.constant 0 : i32
    %c0_i32_0 = arith.constant 0 : i32
    %c0_i32_1 = arith.constant 0 : i32
    return %c0_i32, %c0_i32_0 : i32, i32
  }
  func.func @transform_4(%arg0: i32) -> (i32, i32) {
    %c0_i32 = arith.constant 0 : i32
    %c0_i32_0 = arith.constant 0 : i32
    %c0_i32_1 = arith.constant 0 : i32
    return %c0_i32, %c0_i32_0 : i32, i32
  }
  func.func @transform_5(%arg0: i32) -> (i32, i32) {
    %c0_i32 = arith.constant 0 : i32
    %c0_i32_0 = arith.constant 0 : i32
    %c0_i32_1 = arith.constant 0 : i32
    return %c0_i32, %c0_i32_0 : i32, i32
  }
  func.func @transform_6(%arg0: i32) -> (i32, i32) {
    %c0_i32 = arith.constant 0 : i32
    %c0_i32_0 = arith.constant 0 : i32
    %c0_i32_1 = arith.constant 0 : i32
    return %c0_i32, %c0_i32_0 : i32, i32
  }
  func.func @transform_7(%arg0: i32) -> (i32, i32) {
    %c0_i32 = arith.constant 0 : i32
    %c0_i32_0 = arith.constant 0 : i32
    %c0_i32_1 = arith.constant 0 : i32
    return %c0_i32, %c0_i32_0 : i32, i32
  }
  func.func @transform_8(%arg0: i32) -> (i32, i32) {
    %c0_i32 = arith.constant 0 : i32
    %c0_i32_0 = arith.constant 0 : i32
    %c0_i32_1 = arith.constant 0 : i32
    return %c0_i32, %c0_i32_0 : i32, i32
  }
  func.func @transform_9(%arg0: i32) -> (i32, i32) {
    %c0_i32 = arith.constant 0 : i32
    %c0_i32_0 = arith.constant 0 : i32
    %c0_i32_1 = arith.constant 0 : i32
    return %c0_i32, %c0_i32_0 : i32, i32
  }
  func.func @transform_10(%arg0: i32) -> (i32, i32) {
    %c0_i32 = arith.constant 0 : i32
    %c0_i32_0 = arith.constant 0 : i32
    %c0_i32_1 = arith.constant 0 : i32
    return %c0_i32, %c0_i32_0 : i32, i32
  }
  func.func @transform_11(%arg0: i32) -> (i32, i32) {
    %c0_i32 = arith.constant 0 : i32
    %c0_i32_0 = arith.constant 0 : i32
    %c0_i32_1 = arith.constant 0 : i32
    return %c0_i32, %c0_i32_0 : i32, i32
  }
  func.func @transform_12(%arg0: i32) -> (i32, i32) {
    %c0_i32 = arith.constant 0 : i32
    %c0_i32_0 = arith.constant 0 : i32
    %c0_i32_1 = arith.constant 0 : i32
    return %c0_i32, %c0_i32_0 : i32, i32
  }
  func.func @transform_13(%arg0: i32) -> (i32, i32) {
    %c0_i32 = arith.constant 0 : i32
    %c0_i32_0 = arith.constant 0 : i32
    %c0_i32_1 = arith.constant 0 : i32
    return %c0_i32, %c0_i32_0 : i32, i32
  }
  func.func @transform_14(%arg0: i32) -> (i32, i32) {
    %c0_i32 = arith.constant 0 : i32
    %c0_i32_0 = arith.constant 0 : i32
    %c0_i32_1 = arith.constant 0 : i32
    return %c0_i32, %c0_i32_0 : i32, i32
  }
  func.func @transform_15(%arg0: i32) -> (i32, i32) {
    %c0_i32 = arith.constant 0 : i32
    %c0_i32_0 = arith.constant 0 : i32
    %c0_i32_1 = arith.constant 0 : i32
    return %c0_i32, %c0_i32_0 : i32, i32
  }
  func.func @transform_16(%arg0: i32) -> (i32, i32) {
    %c0_i32 = arith.constant 0 : i32
    %c0_i32_0 = arith.constant 0 : i32
    %c0_i32_1 = arith.constant 0 : i32
    return %c0_i32, %c0_i32_0 : i32, i32
  }
  func.func @transform_17(%arg0: i32) -> (i32, i32, i32) {
    %c0_i32 = arith.constant 0 : i32
    %c0_i32_0 = arith.constant 0 : i32
    %c0_i32_1 = arith.constant 0 : i32
    return %arg0, %c0_i32, %c0_i32_0 : i32, i32, i32
  }
}

</mosaic_0001>

<bundles_post_ra>
// kernel: tpu_custom_call.1
= control target key start
LH: loop header
LB: loop body
LE: loop exit
PB: predicated region body
PF: predicated region fallthrough
CT: control target
= control target key end

     0   :  { %s1701_s0 = inlined_call_operand.vmem [shape: f32[2,8,32], index: 0, kind: input, shape index: {}]   ;;  %s1702_s1 = inlined_call_operand.vmem [shape: bf16[32,32], index: 1, kind: input, shape index: {}]   ;;  %s1703_s2 = inlined_call_operand.vmem [shape: f32[1,32], index: 2, kind: input, shape index: {}]   ;;  %s1704_s3 = inlined_call_operand.vmem [shape: bf16[32,32], index: 3, kind: input, shape index: {}]   ;;  %s1705_s4 = inlined_call_operand.vmem [shape: f32[1,32], index: 4, kind: input, shape index: {}]   ;;  %s1706_s5 = inlined_call_operand.hbm [shape: bf16[32,32], index: 5, kind: input, shape index: {}]   ;;  %s1707_s6 = inlined_call_operand.vmem [shape: f32[1,32], index: 6, kind: input, shape index: {}]   ;;  %s1708_s7 = inlined_call_operand.hbm [shape: bf16[32,32], index: 7, kind: input, shape index: {}]   ;;  %s1709_s8 = inlined_call_operand.vmem [shape: f32[1,32], index: 8, kind: input, shape index: {}]   ;;  %s1710_s9 = inlined_call_operand.vmem [shape: f32[1,32], index: 9, kind: input, shape index: {}]   ;;  %s1711_s10 = inlined_call_operand.vmem [shape: f32[1,32], index: 10, kind: input, shape index: {}]   ;;  %s1712_s11 = inlined_call_operand.hbm [shape: bf16[32,64], index: 11, kind: input, shape index: {}]   ;;  %s1713_s12 = inlined_call_operand.vmem [shape: f32[1,64], index: 12, kind: input, shape index: {}]   ;;  %s1714_s13 = inlined_call_operand.vmem [shape: bf16[64,32], index: 13, kind: input, shape index: {}]   ;;  %s1715_s14 = inlined_call_operand.vmem [shape: f32[1,32], index: 14, kind: input, shape index: {}]   ;;  %s1716_s15 = inlined_call_operand.vmem [shape: f32[1,32], index: 15, kind: input, shape index: {}]   ;;  %s1717_s16 = inlined_call_operand.vmem [shape: f32[1,32], index: 16, kind: input, shape index: {}]   ;;  %s1718_s17 = inlined_call_operand.hbm [shape: f32[2,8,32], index: 17, kind: output, shape index: {}]  }
   0x1   :  { %1726 = sst [smem:[#allocation18_spill]] %s1701_s0 }
   0x2   :  { %1727 = sst [smem:[#allocation19_spill]] %s1702_s1 }
   0x3   :  { %1728 = sst [smem:[#allocation20_spill]] %s1706_s5 }
   0x4   :  { %1729 = sst [smem:[#allocation21_spill]] %s1708_s7 }
   0x5   :  { %1730 = sst [smem:[#allocation22_spill]] %s1717_s16 }
   0x6   :  { %22 = vsyncpa [#allocation3], 0 }
   0x7   :  { %23 = vsyncpa [#allocation6], 0 }
   0x8   :  { %24 = vsyncpa [#allocation4], 0 }
   0x9   :  { %26 = vsyncpa [#allocation4 + $0x1], 0  ;;  %s1509_s24 = smov 0   ;;  %s1511_s25 = smov 0  }
   0xa   :  { %s1513_s26 = smov 0   ;;  %s1515_s27 = smov 0  }
   0xb LB: > { %1731 = sst [smem:[#allocation12_spill]] %s1399_s24  ;;  %s1530_s28 = sadd.s32 4294967295, %s1411_s27   ;;  %s1411_s27 = sphi %s1515_s27, %s1749_s27   ;;  %s1407_s26 = sphi %s1513_s26, %s1751_s26   ;;  %s1403_s25 = sphi %s1511_s25, %s1753_s25   ;;  %s1399_s24 = sphi %s1509_s24, %s1752_s24  }
   0xc   : > { %1732 = sst [smem:[#allocation13_spill]] %s1407_s26  ;;  %s1064_s29 = sadd.s32 4294967294, %s1411_s27  }
   0xd   : > { %1733 = sst [smem:[#allocation14_spill]] %s1411_s27  ;;  %s1534_s0 = sadd.s32 1, %s1411_s27  }
   0xe   : > { %1734 = sst [smem:[#allocation15_spill]] %s1534_s0  ;;  %s401_s30 = sadd.s32 1, %s1407_s26 }
   0xf   : > { %s398_s18 = ssub.s32 %s1411_s27, %s1534_s0  ;;  %p411_p0 = scmp.ne.s32.totalorder %s1407_s26, %s1403_s25 }
  0x10   : > { %p399_p1 = scmp.eq.s32.totalorder %s398_s18, 0  ;;  %p412_p2 = scmp.eq.s32.totalorder %s1530_s28, 1 }
  0x11   : > { %p417_p3 = scmp.ne.s32.totalorder %s1403_s25, %s1399_s24  ;;  %p418_p4 = scmp.eq.s32.totalorder %s1064_s29, 1 }
  0x12   : > { %s1545_s19 = scalar_select %p399_p1, %s1407_s26, %s401_s30  }
  0x13   : > { %p1547_p5 = por %p412_p2, %p411_p0  ;;  %p1551_p6 = por %p418_p4, %p417_p3 }
  0x14   : > { %1735 = sst [smem:[#allocation16_spill]] %s1545_s19  ;;  %p1065_p7 = scmp.ge.s32.totalorder %s1411_s27, 1 }
  0x15   : > { %s1737_s20 = scalar_select %p1551_p6, 1, 0 }
  0x16   : > { %p425_p8 = scmp.lt.s32.totalorder %s1411_s27, 3  ;;  %p1186_p9 = scmp.eq.s32.totalorder %s1530_s28, 0 }
  0x17   : > { %1738 = sst [smem:[#allocation17_spill]] %s1737_s20  ;;  %s1413_s0 = smov [#allocation5]  }
  0x18   : > { %p1558_p10 = pnand %p1065_p7, %p425_p8  ;;  %s1740_s7 = sld [smem:[#allocation21_spill]] }
  0x19   : > { %s1741_s5 = sld [smem:[#allocation20_spill]]  ;;  %s467_s20 = sshll.u32 %s1413_s0, 4  ;;  %s468_s20 = int_to_ptr.vmem [resolvable:$true] %s467_s20 }
  0x1a   : > { %p1172_p11 = pneg %p1558_p10  ;;  %s1414_s22 = smov 64  }
  0x1b   : > { %s1415_s23 = smov 4   ;;  %s1417_s27 = smov [#allocation7]  }
  0x1c   : > { %p1572_p12 = pnand %p1186_p9, %p1172_p11  ;;  %s490_s16 = sshll.u32 %s1417_s27, 4  ;;  %s491_s16 = int_to_ptr.vmem [resolvable:$true] %s490_s16 }
  0x1e   : > { %s465_s29 = sshll.u32 %s1740_s7, 4  ;;  %s1416_s7 = smov [#allocation2]   ;;  %s466_s29 = int_to_ptr.hbm [resolvable:$true] %s465_s29 }
  0x1f   : > { %s448_s19 = sshll.u32 %s1741_s5, 4  ;;  %s450_s24 = sshll.u32 %s1416_s7, 4  ;;  %s449_s19 = int_to_ptr.hbm [resolvable:$true] %s448_s19  ;;  %s451_s24 = int_to_ptr.vmem [resolvable:$true] %s450_s24 }
  0x20   : > { %1178 = dma.hbm_to_vmem [thread:$0]  (!%p1572_p12), %s466_s29, 256, %s468_s20, [#allocation6], %s1414_s22, %s1414_s22, %s1415_s23  }
  0x21   : > { %s488_s5 = sshll.u32 %s1712_s11, 4  ;;  %528 = sbr.rel (%p1558_p10) target bundleno = 1651 (0x673), region = 88  ;;  %s489_s5 = int_to_ptr.hbm [resolvable:$true] %s488_s5 }
  0x22   : > { %1175 = dma.hbm_to_vmem [thread:$0]  (!%p1572_p12), %s449_s19, 256, %s451_s24, [#allocation3], %s1414_s22, %s1414_s22, %s1415_s23  }
  0x23   : > { %1181 = dma.hbm_to_vmem [thread:$0]  (!%p1572_p12), %s489_s5, 256, %s491_s16, [#allocation6], %s1414_s22, %s1414_s22, %s1415_s23  }
  0x26   : > { %1386 = dma.done.wait (%p1186_p9), [#allocation3], 256  }
  0x27   : > { %1388 = vsyncadd (%p1186_p9), [#allocation3], 4294967040 }
  0x28   : > { %1390 = dma.done.wait (%p1186_p9), [#allocation6], 512  }
  0x29   : > { %1392 = vsyncadd (%p1186_p9), [#allocation6], 4294966784  ;;  %p590_p13 = scmp.lt.s32.totalorder %s1530_s28, 1  ;;  %s1743_s26 = sld [smem:[#allocation18_spill]]  ;;  %v1147_v1 = vld [vmem:[%s1704_s3 + $0x8] sm:$0xff]  ;;  %v1146_v3 = vld [vmem:[%s1704_s3] sm:$0xff] }
  0x2a   : > { %s1744_s20 = sld [smem:[#allocation19_spill]]  ;;  %660 = vmatpush.bf16.msra.mxu1 %v1147_v1  ;;  %vm617_vm0 = vcmask 261120   ;;  %v1232_v6 = vld [vmem:[%s1705_s4] ss:$0 sm:$0xff]  ;;  %v1149_v17 = vld [vmem:[#allocation2 + $0x8] sm:$0xff]  ;;  %vm721_vm1 = vcmask 64512  }
  0x2b   : > { %s591_s7 = scalar_select %p590_p13, %s1530_s28, 1  ;;  %v1231_v9 = vld [vmem:[%s1703_s2] ss:$0 sm:$0xff]  ;;  %693 = vmatpush.bf16.msra.mxu2 %v1149_v17  ;;  %vm738_vm2 = vcmask 1043456   ;;  %v1151_v33 = vld [vmem:[#allocation5 + $0x8] sm:$0xff]  ;;  %v1150_v34 = vld [vmem:[#allocation5] sm:$0xff] }
  0x2c   : > { %v1148_v18 = vld [vmem:[#allocation2] sm:$0xff]  ;;  %v1418_v48 = vmov 32.0   ;;  %v1153_v60 = vld [vmem:[#allocation7 + $0x8] sm:$0xff]  ;;  %v1157_v62 = vld [vmem:[%s1714_s13 + $0x18] sm:$0xff]  ;;  %vm907_vm7 = vcmask 523264   ;;  %s587_s22 = sand.u32 1, %s1403_s25  }
  0x2d   : > { %s1075_s5 = sshll.u32 %s591_s7, 3  ;;  %v1233_v22 = vld [vmem:[%s1707_s6] ss:$0 sm:$0xff]  ;;  %v1156_v1 = vld [vmem:[%s1714_s13 + $0x10] sm:$0xff]  ;;  %s1074_s23 = sshll.u32 %s587_s22, 3 }
  0x2e   : > { %661 = vmatpush.bf16.msra.mxu1 %v1146_v3  ;;  %v1234_v42 = vld [vmem:[%s1709_s8] ss:$0 sm:$0xff]  ;;  %v1155_v3 = vld [vmem:[%s1714_s13 + $0x8] sm:$0xff]  ;;  %s1141_s30 = sshll.u32 %s1530_s28, 3  ;;  %s1745_s0 = sld [smem:[#allocation22_spill]] }
  0x2f   : > { %s593_s27 = scalar_lea.vmem %s1743_s26, %s1075_s5  ;;  %694 = vmatpush.bf16.msra.mxu2 %v1148_v18  ;;  %v1152_v61 = vld [vmem:[#allocation7] sm:$0xff]  ;;  %s969_s24 = scalar_lea.hbm %s1718_s17, %s1141_s30 }
  0x30   : > { %v1145_v0 = vld [vmem:[%s1744_s20 + $0x8] sm:$0xff]  ;;  %v1144_v2 = vld [vmem:[%s1744_s20] sm:$0xff]  ;;  %s589_s19 = scalar_lea.vmem [#allocation8], %s1074_s23  ;;  %s973_s21 = sshll.u32 %s969_s24, 4  ;;  %s974_s21 = int_to_ptr.hbm [resolvable:$true] %s973_s21 }
  0x31   : > { %627 = vmatpush.bf16.msra.mxu0 %v1145_v0  ;;  %v595_v4 = vld [vmem:[%s593_s27] sm:$0xff]  ;;  %s971_s28 = sshll.u32 %s589_s19, 4  ;;  %s959_s29 = scalar_lea.sflag [#allocation4], %s587_s22  ;;  %s972_s28 = int_to_ptr.vmem [resolvable:$true] %s971_s28 }
  0x32   : > { %v596_v5 = vpack.c.bf16 %v595_v4, %v595_v4  ;;  %785 = vmatpush.bf16.msrb.mxu1 %v1151_v33  ;;  %v1154_v17 = vld [vmem:[%s1714_s13] sm:$0xff]  ;;  %s1355_s18 = sshra.s32 %s974_s21, 4  ;;  %s1361_s23 = scalar_lea.hbm %s1718_s17, 16  ;;  %s1356_s18 = int_to_ptr.hbm [resolvable:$true] %s1355_s18 }
  0x33   : > { %862 = vmatpush.bf16.msrb.mxu2 %v1153_v60  ;;  %v1237_v18 = vld [vmem:[%s1713_s12] ss:$0 sm:$0xff]  ;;  %s1357_s30 = scalar_lea.hbm %s1356_s18, 8  ;;  %p1362_p3 = scmp.lt.s32.totalorder %s1356_s18, %s1718_s17 }
  0x34   : > { %1093 = vmatmul.msk.bf16.vlgmr.msra.gmra.mxu1 %vm617_vm0, %v596_v5  ;;  %1102 = vmatmul.msk.bf16.vlgmr.msra.gmra.mxu2 %vm617_vm0, %v596_v5  ;;  %p1358_p0 = scmp.ne.s32.totalorder %s1356_s18, %s1357_s30  ;;  %p1363_p4 = scmp.lt.s32.totalorder %s1361_s23, %s1357_s30 }
  0x35   : > { %628 = vmatpush.bf16.msra.mxu0 %v1144_v2 }
  0x36   : > { %786 = vmatpush.bf16.msrb.mxu1 %v1150_v34  ;;  %p1359_p1 = pnand %p1358_p0, %p1547_p5  ;;  %p1364_p7 = por %p1363_p4, %p1362_p3 }
  0x37   : > { %863 = vmatpush.bf16.msrb.mxu2 %v1152_v61 }
  0x38   : > { %1084 = vmatmul.msk.bf16.vlgmr.msra.gmra.mxu0 %vm617_vm0, %v596_v5  ;;  %p1360_p2 = pneg %p1359_p1 }
  0x3a   : > { %p1365_p8 = pnand %p1364_p7, %p1360_p2 }
  0xb1   : > { %v663_v8 = vpop.f32.mrf.mxu1 }
  0xb2   : > { %v664_v10 = vadd.f32 %v1232_v6, %v663_v8 }
  0xb4   : > { %v701_v11 = vpack.c.bf16 %v664_v10, %v664_v10  ;;  %v1235_v10 = vld [vmem:[%s1710_s9] ss:$0 sm:$0xff] }
  0xb5   : > { %v630_v7 = vpop.f32.mrf.mxu0 }
  0xb6   : > { %v631_v12 = vadd.f32 %v1231_v9, %v630_v7  ;;  %v706_v13 = vsel %vm617_vm0, %v701_v11, 0 }
  0xb7   : > { %715 = vmatpush.bf16.xpose.msra.mxu3 %v706_v13  ;;  %v696_v23 = vpop.f32.mrf.mxu2  ;;  %v1236_v13 = vld [vmem:[%s1711_s10] ss:$0 sm:$0xff] }
  0xb8   : > { %v700_v16 = vpack.c.bf16 %v631_v12, %v631_v12  ;;  %v697_v25 = vadd.f32 %v1233_v22, %v696_v23 }
  0xb9   : > { %v665_v15 = vpop.f32.mrf.mxu1 }
  0xba   : > { %v733_v27 = vpack.c.bf16 %v697_v25, %v697_v25 }
  0xbc   : > { %v740_v29 = vsel %vm738_vm2, %v733_v27, 0 }
  0xbd   : > { %v632_v14 = vpop.f32.mrf.mxu0  ;;  %749 = vmatpush.bf16.msrb.mxu0 %v740_v29 }
  0xbe   : > { %1103 = vmatmul.msk.bf16.vlgmr.msra.gmra.mxu3 %vm617_vm0, %v700_v16 }
  0xbf   : > { %v698_v30 = vpop.f32.mrf.mxu2  ;;  %915 = vmatpush.bf16.msrb.mxu3 %v1157_v62 }
  0xc3   : > { %916 = vmatpush.bf16.msrb.mxu3 %v1156_v1 }
  0xc7   : > { %917 = vmatpush.bf16.msrb.mxu3 %v1155_v3 }
  0xcb   : > { %918 = vmatpush.bf16.msrb.mxu3 %v1154_v17 }
 0x141   : > { %v717_v19 = vpop.f32.mrf.mxu3 }
 0x142   : > { %v722_v20 = vsel %vm721_vm1, %v717_v19, -inf }
 0x143   : > { %723 = vmax.xlane.f32.xlu0 %v722_v20 }
 0x149   : > { %v719_v21 = vpop.f32.mrf.mxu3 }
 0x1b6   : > { %v724_v24 = vpop.xlane.xlu0 %723 }
 0x1b7   : > { %v725_v26 = vsub.f32 %v717_v19, %v724_v24  ;;  %v1238_v24 = vld [vmem:[%s1715_s14] ss:$0 sm:$0xff] }
 0x1b9   : > { %v726_v28 = vmul.f32 1.442695, %v725_v26 }
 0x1bb   : > { %1241 = vpow2.f32 %v726_v28 }
 0x1c1   : > { %v1242_v31 = vpop.eup %1241 }
 0x1c2   : > { %v728_v32 = vsel %vm721_vm1, %v1242_v31, 0.0 }
 0x1c3   : > { %729 = vadd.xlane.f32.xlu0 %v728_v32 }
 0x236   : > { %v730_v35 = vpop.xlane.xlu0 %729 }
 0x237   : > { %1243 = vrcp.f32 %v730_v35 }
 0x238   : > { %1245 = vrcp.f32 %v1418_v48 }
 0x23d   : > { %v1244_v36 = vpop.eup %1243 }
 0x23e   : > { %v732_v37 = vmul.f32 %v1244_v36, %v1242_v31  ;;  %v1246_v49 = vpop.eup %1245 }
 0x23f   : > { %v797_v50 = vmul.f32 32.0, %v1246_v49  ;;  %vm801_vm3 = vweird.f32 %v1246_v49 }
 0x240   : > { %v734_v38 = vpack.c.bf16 %v732_v37, %v732_v37 }
 0x241   : > { %v798_v51 = vsub.f32 1.0, %v797_v50 }
 0x242   : > { %1104 = vmatmul.msk.bf16.vlgmr.msrb.gmra.mxu0 %vm721_vm1, %v734_v38 }
 0x243   : > { %v799_v52 = vmul.f32 %v1246_v49, %v798_v51 }
 0x245   : > { %v800_v53 = vadd.f32 %v1246_v49, %v799_v52 }
 0x247   : > { %v802_v54 = vsel %vm801_vm3, %v1246_v49, %v800_v53 }
 0x2bf   : > { %v751_v39 = vpop.f32.mrf.mxu0 }
 0x2c0   : > { %v755_v40 = vpack.c.bf16 %v751_v39, %v751_v39 }
 0x2c2   : > { %1113 = vmatmul.msk.bf16.vlgmr.msrb.gmra.mxu1 %vm617_vm0, %v755_v40 }
 0x2c7   : > { %v753_v41 = vpop.f32.mrf.mxu0 }
 0x33f   : > { %v788_v43 = vpop.f32.mrf.mxu1 }
 0x340   : > { %v789_v44 = vadd.f32 %v1234_v42, %v788_v43 }
 0x342   : > { %v792_v45 = vadd.f32 %v789_v44, %v595_v4  ;;  %v1239_v44 = vld [vmem:[%s1716_s15] ss:$0 sm:$0xff] }
 0x344   : > { %v793_v46 = vsel %vm617_vm0, %v792_v45, 0.0 }
 0x345   : > { %794 = vadd.xlane.f32.xlu1 %v793_v46 }
 0x347   : > { %v790_v47 = vpop.f32.mrf.mxu1 }
 0x348   : > { %v1240_v47 = vld [vmem:[%s1745_s0] ss:$0 sm:$0xff] }
 0x3b8   : > { %v795_v55 = vpop.xlane.xlu1 %794 }
 0x3b9   : > { %v803_v56 = vmul.f32 %v802_v54, %v795_v55 }
 0x3bb   : > { %v804_v57 = vsub.f32 %v792_v45, %v803_v56 }
 0x3bd   : > { %v805_v58 = vmul.f32 %v804_v57, %v804_v57 }
 0x3bf   : > { %v806_v59 = vsel %vm617_vm0, %v805_v58, 0.0 }
 0x3c0   : > { %807 = vadd.xlane.f32.xlu1 %v806_v59 }
 0x433   : > { %v808_v63 = vpop.xlane.xlu1 %807 }
 0x434   : > { %v809_v0 = vmul.f32 %v808_v63, %v802_v54 }
 0x436   : > { %v810_v2 = vadd.f32 1e-05, %v809_v0 }
 0x438   : > { %1247 = vrsqrt.f32 %v810_v2  ;;  %vm817_vm5 = vweird.f32 %v810_v2 }
 0x43e   : > { %v1248_v4 = vpop.eup %1247 }
 0x43f   : > { %v812_v5 = vmul.f32 %v1248_v4, %v810_v2  ;;  %vm818_vm4 = vweird.f32 %v1248_v4 }
 0x440   : > { %vm819_vm6 = vmor %vm817_vm5, %vm818_vm4 }
 0x441   : > { %v813_v6 = vmul.f32 %v1248_v4, %v812_v5 }
 0x443   : > { %v814_v7 = vmul.f32 0.5, %v813_v6 }
 0x445   : > { %v815_v8 = vsub.f32 1.5, %v814_v7 }
 0x447   : > { %v816_v9 = vmul.f32 %v1248_v4, %v815_v8 }
 0x449   : > { %v820_v11 = vsel %vm819_vm6, %v1248_v4, %v816_v9 }
 0x44a   : > { %v821_v12 = vmul.f32 %v820_v11, %v804_v57 }
 0x44c   : > { %v826_v14 = vmul.f32 %v1235_v10, %v821_v12 }
 0x44e   : > { %v831_v15 = vadd.f32 %v1236_v13, %v826_v14 }
 0x450   : > { %v832_v16 = vpack.c.bf16 %v831_v15, %v831_v15 }
 0x452   : > { %1122 = vmatmul.msk.bf16.vlgmr.msrb.gmra.mxu2 %vm617_vm0, %v832_v16 }
 0x4d5   : > { %v865_v19 = vpop.f32.mrf.mxu2 }
 0x4d6   : > { %v866_v20 = vadd.f32 %v1237_v18, %v865_v19 }
 0x4d8   : > { %v869_v21 = vmax.f32 %v866_v20, 0.0 }
 0x4da   : > { %v870_v22 = vpack.c.bf16 %v869_v21, %v869_v21 }
 0x4dc   : > { %1139 = vmatmul.msk.bf16.vlgmr.msrb.gmra.mxu3 %vm907_vm7, %v870_v22 }
 0x4dd   : > { %v867_v23 = vpop.f32.mrf.mxu2 }
 0x55f   : > { %v920_v25 = vpop.f32.mrf.mxu3 }
 0x560   : > { %v921_v26 = vadd.f32 %v1238_v24, %v920_v25 }
 0x562   : > { %v924_v27 = vadd.f32 %v921_v26, %v831_v15 }
 0x564   : > { %v925_v28 = vsel %vm617_vm0, %v924_v27, 0.0 }
 0x565   : > { %926 = vadd.xlane.f32.xlu2 %v925_v28 }
 0x567   : > { %v922_v29 = vpop.f32.mrf.mxu3 }
 0x5d8   : > { %v927_v30 = vpop.xlane.xlu2 %926 }
 0x5d9   : > { %v928_v31 = vmul.f32 %v927_v30, %v802_v54 }
 0x5db   : > { %v929_v32 = vsub.f32 %v924_v27, %v928_v31 }
 0x5dd   : > { %v930_v33 = vmul.f32 %v929_v32, %v929_v32 }
 0x5df   : > { %v931_v34 = vsel %vm617_vm0, %v930_v33, 0.0 }
 0x5e0   : > { %932 = vadd.xlane.f32.xlu2 %v931_v34 }
 0x653   : > { %v933_v35 = vpop.xlane.xlu2 %932 }
 0x654   : > { %v934_v36 = vmul.f32 %v933_v35, %v802_v54 }
 0x656   : > { %v935_v37 = vadd.f32 1e-05, %v934_v36 }
 0x658   : > { %1249 = vrsqrt.f32 %v935_v37  ;;  %vm942_vm9 = vweird.f32 %v935_v37 }
 0x65e   : > { %v1250_v38 = vpop.eup %1249 }
 0x65f   : > { %v937_v39 = vmul.f32 %v1250_v38, %v935_v37  ;;  %vm943_vm8 = vweird.f32 %v1250_v38 }
 0x660   : > { %vm944_vm10 = vmor %vm942_vm9, %vm943_vm8 }
 0x661   : > { %v938_v40 = vmul.f32 %v1250_v38, %v937_v39 }
 0x663   : > { %v939_v41 = vmul.f32 0.5, %v938_v40 }
 0x665   : > { %v940_v42 = vsub.f32 1.5, %v939_v41 }
 0x667   : > { %v941_v43 = vmul.f32 %v1250_v38, %v940_v42 }
 0x669   : > { %v945_v45 = vsel %vm944_vm10, %v1250_v38, %v941_v43 }
 0x66a   : > { %v946_v46 = vmul.f32 %v945_v45, %v929_v32 }
 0x66c   : > { %v951_v48 = vmul.f32 %v1239_v44, %v946_v46 }
 0x66e   : > { %v956_v49 = vadd.f32 %v1240_v47, %v951_v48 }
 0x670   : > { %957 = vst.msk [vmem:[%s589_s19] sm:$0xff] %vm617_vm0, %v956_v49 }
 0x671   : > { %1368 = shalt.err (!%p1365_p8)
}
 0x672   : > { %1170 = dma.vmem_to_hbm [thread:$0]  (%p1547_p5), %s972_s28, 128, %s974_s21, %s959_s29  }
 0x673 PF: > { %s1746_s22 = sld [smem:[#allocation14_spill]] }
 0x674   : > { %s1747_s26 = sld [smem:[#allocation12_spill]] }
 0x679   : > { %p1192_p9 = scmp.ge.s32.totalorder %s1746_s22, 2 }
 0x67a   : > { %s985_s0 = sand.u32 1, %s1747_s26  }
 0x67b   : > { %p1183_p10 = pnand %p1192_p9, %p1551_p6  ;;  %s986_s19 = scalar_lea.sflag [#allocation4], %s985_s0 }
 0x67d   : > { %p1184_p11 = pneg %p1183_p10 }
 0x67f   : > { %1394 = dma.done.wait (%p1184_p11), %s986_s19, 128  }
 0x680   : > { %1396 = vsyncadd (%p1184_p11), %s986_s19, 4294967168  ;;  %s1749_s27 = sld [smem:[#allocation15_spill]]  ;;  %s1752_s24 = smov %s1403_s25 }
 0x681   : > { %s1750_s18 = sld [smem:[#allocation13_spill]] }
 0x682   : > { %s1751_s26 = sld [smem:[#allocation16_spill]] }
 0x686   : > { %p29_p12 = scmp.ge.s32.totalorder %s1749_s27, 4  }
 0x687   : > { %s1753_s25 = smov %s1750_s18 }
 0x688   :  { %31 = sbr.rel (!%p29_p12) target bundleno = 11 (0xb), region = 136 }
 0x68d   :  { %992 = vsyncpa [#allocation3], 1 }
 0x68e   :  { %994 = vsyncpa [#allocation3 + $0x1], 1 }
 0x68f   :  { %995 = vsyncpa [#allocation6], 1 }
 0x690   :  { %996 = vsyncpa [#allocation4], 1 }
 0x691   :  { %998 = vsyncpa [#allocation4 + $0x1], 1 }

</bundles_post_ra>
